<compile_context>
chip_gen: v7x
topology: tpu7x:2x2x1
jax: 0.10.0
libtpu: 0.0.40
codegen_flags: <defaults>
</compile_context>

<pallas_src>
import jax
import jax.numpy as jnp
from jax import lax
from jax.experimental import pallas as pl
from jax.experimental.pallas import tpu as pltpu


def _round_up(x, m):
    return (x + m - 1) // m * m


def _make_kernel(td, D, num_k):
    """Build the kernel body. td, D, num_k are trace-time constants."""
    n_chunks = td // 128                 # 128-lane chunks per D tile
    ragged = (D % td) != 0
    last_base = (num_k - 1) * td
    rem = D - last_base                  # valid columns in the last k tile
    full_last = rem // 128               # fully-valid chunks in the last tile
    partial = rem % 128                  # lanes in the single partial chunk

    def kernel(a_ref, b_ref, o_ref):
        k = pl.program_id(1)

        @pl.when(k == 0)
        def _init():
            o_ref[...] = jnp.zeros_like(o_ref)

        def chunk_body(c, acc):
            # Fused: load 128-lane chunk, upcast, subtract, square, add.
            start = pl.multiple_of(c * 128, 128)
            a = a_ref[:, pl.ds(start, 128)].astype(jnp.float32)
            b = b_ref[:, pl.ds(start, 128)].astype(jnp.float32)
            d = a - b
            return acc + d * d

        def accum_full():
            # Steady state: no mask, pure lane-aligned VALU work.
            o_ref[...] = lax.fori_loop(0, n_chunks, chunk_body, o_ref[...])

        def accum_last():
            # Last D tile: full chunks unmasked, exactly one masked chunk,
            # fully-OOB chunks skipped entirely (never loaded).
            acc = lax.fori_loop(0, full_last, chunk_body, o_ref[...])
            if partial:
                start = full_last * 128
                a = a_ref[:, start:start + 128].astype(jnp.float32)
                b = b_ref[:, start:start + 128].astype(jnp.float32)
                d = a - b
                sq = d * d
                lane = lax.broadcasted_iota(jnp.int32, sq.shape, 1)
                # Zero OOB lanes BEFORE accumulating (keeps valid rows clean).
                sq = jnp.where(lane < partial, sq, 0.0)
                acc = acc + sq
            o_ref[...] = acc

        if not ragged:
            accum_full()
        else:
            if num_k > 1:
                @pl.when(k != num_k - 1)
                def _steady():
                    accum_full()

            @pl.when(k == num_k - 1)
            def _last():
                accum_last()

    return kernel


def mean_square_error(A, B, *, tn=None, td=None,
                      target_block_bytes=8 << 20,
                      vmem_limit_bytes=48 * 1024 * 1024):
    """Pallas equivalent of MeanSquareError.forward(A, B)."""
    assert A.shape == B.shape, (A.shape, B.shape)
    N = A.shape[0]
    a2 = A.reshape(N, -1)    # no dtype cast, no padding on the host side
    b2 = B.reshape(N, -1)
    D = a2.shape[1]
    itemsize = jnp.dtype(a2.dtype).itemsize
    # Sublane packing factor: 8 rows for 4-byte, 16 for 2-byte, 32 for 1-byte.
    pack = 8 * max(1, 4 // itemsize)

    # ---- batch tile -------------------------------------------------------
    if tn is None:
        tn = 64
    tn = min(tn, N)
    if tn < N:
        # Keep the (sublane, 128) tiling rule satisfied for partial-batch tiles.
        tn = _round_up(tn, pack)
        if tn >= N:
            tn = N

    # ---- D tile (multiple of 128, ~target_block_bytes per input block) -----
    d_padded = _round_up(D, 128)
    if td is None:
        td = (target_block_bytes // (tn * itemsize)) // 128 * 128
    td = _round_up(max(td, 128), 128)
    td = min(td, d_padded)

    num_i = pl.cdiv(N, tn)
    num_k = pl.cdiv(D, td)

    kernel = _make_kernel(td, D, num_k)

    # Lane-dense (N, 128) partial sums; the output block doubles as the
    # accumulator (same output block index across the k axis).
    partial_sums = pl.pallas_call(
        kernel,
        out_shape=jax.ShapeDtypeStruct((N, 128), jnp.float32),
        grid_spec=pltpu.PrefetchScalarGridSpec(
            num_scalar_prefetch=0,
            grid=(num_i, num_k),
            in_specs=[
                pl.BlockSpec((tn, td), lambda i, k: (i, k)),
                pl.BlockSpec((tn, td), lambda i, k: (i, k)),
            ],
            out_specs=pl.BlockSpec((tn, 128), lambda i, k: (i, 0)),
        ),
        compiler_params=pltpu.CompilerParams(
            dimension_semantics=("parallel", "arbitrary"),
            vmem_limit_bytes=vmem_limit_bytes,
        ),
    )(a2, b2)

    # Tiny epilogue in plain JAX: cross-lane sum, sqrt, batch mean.
    norms = jnp.sqrt(jnp.sum(partial_sums, axis=1))
    return jnp.mean(norms)


def _reference(A, B):
    N = A.shape[0]
    d = (A.astype(jnp.float32) - B.astype(jnp.float32)).reshape(N, -1)
    return jnp.mean(jnp.sqrt(jnp.sum(d * d, axis=1)))


if __name__ == "__main__":
    key = jax.random.PRNGKey(0)
    ka, kb, kc, kd, ke, kf = jax.random.split(key, 6)

    # Primary case (matches the module's expected input layout).
    A = jax.random.normal(ka, (2, 4, 16, 16), dtype=jnp.float32)
    B = jax.random.normal(kb, (2, 4, 16, 16), dtype=jnp.float32)
    result = mean_square_error(A, B)
    jax.block_until_ready(result)
    ref = _reference(A, B)
    assert jnp.allclose(result, ref, rtol=1e-5, atol=1e-5), (result, ref)

    # Small ragged case (D not a multiple of 128) to exercise the partial chunk.
    A2 = jax.random.normal(kc, (3, 5, 7), dtype=jnp.float32)
    B2 = jax.random.normal(kd, (3, 5, 7), dtype=jnp.float32)
    result2 = mean_square_error(A2, B2)
    jax.block_until_ready(result2)
    ref2 = _reference(A2, B2)
    assert jnp.allclose(result2, ref2, rtol=1e-5, atol=1e-5), (result2, ref2)

    # Multi-tile case with explicit small tiles: ragged batch tile, ragged D
    # tile, multiple i and k grid steps (exercises steady-state + last-tile
    # paths and the output-block accumulator).
    A3 = jax.random.normal(ke, (20, 1000), dtype=jnp.float32)
    B3 = jax.random.normal(kf, (20, 1000), dtype=jnp.float32)
    result3 = mean_square_error(A3, B3, tn=8, td=256)
    jax.block_until_ready(result3)
    ref3 = _reference(A3, B3)
    assert jnp.allclose(result3, ref3, rtol=1e-5, atol=1e-5), (result3, ref3)

    print("KERNEL_OK")
</pallas_src>

<mosaic_0001>
module attributes {stable_mosaic.version = 11 : i64} {
  func.func @kernel(%arg0: i32, %arg1: i32, %arg2: memref<2x1024xf32, #tpu.memory_space<vmem>>, %arg3: memref<2x1024xf32, #tpu.memory_space<vmem>>, %arg4: memref<2x128xf32, #tpu.memory_space<vmem>>) attributes {dimension_semantics = [#tpu.dimension_semantics<parallel>, #tpu.dimension_semantics<arbitrary>], iteration_bounds = array<i64: 1, 1>, scalar_prefetch = 0 : i64, scratch_operands = 0 : i64, tpu.core_type = #tpu.core_type<tc>, window_params = [{transform_indices = @transform_0, window_bounds = array<i64: 2, 1024>}, {transform_indices = @transform_1, window_bounds = array<i64: 2, 1024>}, {transform_indices = @transform_2, window_bounds = array<i64: 2, 128>}]} {
    %c0_i32 = arith.constant 0 : i32
    %0 = arith.cmpi eq, %arg1, %c0_i32 : i32
    %1 = arith.extui %0 : i1 to i32
    %c0_i32_0 = arith.constant 0 : i32
    %2 = arith.cmpi ne, %1, %c0_i32_0 : i32
    scf.if %2 {
      %cst = arith.constant 0.000000e+00 : f32
      %7 = vector.broadcast %cst : f32 to vector<2x128xf32>
      %c0_6 = arith.constant 0 : index
      %c0_7 = arith.constant 0 : index
      %8 = vector.load %arg4[%c0_6, %c0_7] : memref<2x128xf32, #tpu.memory_space<vmem>>, vector<2x128xf32>
      tpu.vector_store %arg4[%c0_6, %c0_7], %7 {strides = array<i32>} : memref<2x128xf32, #tpu.memory_space<vmem>>, vector<2x128xf32>,
    } else {
    }
    %c0 = arith.constant 0 : index
    %c0_1 = arith.constant 0 : index
    %3 = vector.load %arg4[%c0, %c0_1] : memref<2x128xf32, #tpu.memory_space<vmem>>, vector<2x128xf32>
    %c0_i32_2 = arith.constant 0 : i32
    %c8_i32 = arith.constant 8 : i32
    %4 = arith.addi %c0_i32_2, %c8_i32 : i32
    %c1_i32 = arith.constant 1 : i32
    %5 = scf.for %arg5 = %c0_i32_2 to %4 step %c1_i32 iter_args(%arg6 = %3) -> (vector<2x128xf32>)  : i32 {
      %c128_i32 = arith.constant 128 : i32
      %7 = arith.muli %arg5, %c128_i32 : i32
      %8 = tpu.assume_multiple %7, 128 : i32
      %c0_6 = arith.constant 0 : index
      %9 = arith.index_cast %8 : i32 to index
      %10 = vector.load %arg2[%c0_6, %9] : memref<2x1024xf32, #tpu.memory_space<vmem>>, vector<2x128xf32>
      %c0_7 = arith.constant 0 : index
      %11 = arith.index_cast %8 : i32 to index
      %12 = vector.load %arg3[%c0_7, %11] : memref<2x1024xf32, #tpu.memory_space<vmem>>, vector<2x128xf32>
      %13 = arith.subf %10, %12 : vector<2x128xf32>
      %14 = arith.mulf %13, %13 : vector<2x128xf32>
      %15 = arith.addf %arg6, %14 : vector<2x128xf32>
      scf.yield %15 : vector<2x128xf32>
    }
    %c8_i32_3 = arith.constant 8 : i32
    %c0_4 = arith.constant 0 : index
    %c0_5 = arith.constant 0 : index
    %6 = vector.load %arg4[%c0_4, %c0_5] : memref<2x128xf32, #tpu.memory_space<vmem>>, vector<2x128xf32>
    tpu.vector_store %arg4[%c0_4, %c0_5], %5 {strides = array<i32>} : memref<2x128xf32, #tpu.memory_space<vmem>>, vector<2x128xf32>,
    return
  }
  func.func @transform_0(%arg0: i32, %arg1: i32) -> (i32, i32) {
    %c0_i32 = arith.constant 0 : i32
    return %arg0, %arg1 : i32, i32
  }
  func.func @transform_1(%arg0: i32, %arg1: i32) -> (i32, i32) {
    %c0_i32 = arith.constant 0 : i32
    return %arg0, %arg1 : i32, i32
  }
  func.func @transform_2(%arg0: i32, %arg1: i32) -> (i32, i32) {
    %c0_i32 = arith.constant 0 : i32
    %c0_i32_0 = arith.constant 0 : i32
    return %arg0, %c0_i32 : i32, i32
  }
}

</mosaic_0001>

<bundles_post_ra>
// kernel: tpu_custom_call.1
= control target key start
LH: loop header
LB: loop body
LE: loop exit
PB: predicated region body
PF: predicated region fallthrough
CT: control target
= control target key end

     0   :  { %7 = vsyncpa [#allocation3], 0  ;;  %s256_s0 = inlined_call_operand.hbm [shape: f32[2,1024], index: 0, kind: input, shape index: {}]   ;;  %s257_s1 = inlined_call_operand.hbm [shape: f32[2,1024], index: 1, kind: input, shape index: {}]   ;;  %s258_s2 = inlined_call_operand.hbm [shape: f32[2,128], index: 2, kind: output, shape index: {}]  }
   0x1   :  { %8 = vsyncpa [#allocation6], 0 }
   0x2   :  { %9 = vsyncpa [#allocation4], 0  ;;  %s201_s9 = smov [#allocation2]   ;;  %s202_s11 = smov [#allocation5]  }
   0x3   :  { %s16_s10 = sshll.u32 %s201_s9, 4  ;;  %s26_s12 = sshll.u32 %s202_s11, 4  ;;  %s17_s10 = int_to_ptr.vmem [resolvable:$true] %s16_s10  ;;  %s27_s12 = int_to_ptr.vmem [resolvable:$true] %s26_s12 }
   0x4   :  { %s113_s15 = scalar_lea.hbm %s256_s0, 256 }
   0x5   :  { %p114_p0 = scmp.ne.s32.totalorder %s256_s0, %s113_s15  ;;  %p117_p1 = scmp.lt.u32.totalorder %s113_s15, %s256_s0 }
   0x7   :  { %p119_p2 = pnand %p117_p1, %p114_p0 }
   0x9   :  { %122 = shalt.err (!%p119_p2)
}
   0xa   :  { %s123_s20 = scalar_lea.vmem %s17_s10, 256  ;;  %p128_p4 = scmp.lt.s32.totalorder %s17_s10, %s17_s10 }
   0xb   :  { %p124_p3 = scmp.ne.s32.totalorder %s17_s10, %s123_s20  ;;  %p129_p5 = scmp.lt.s32.totalorder %s123_s20, %s123_s20 }
   0xd   :  { %p130_p6 = por %p129_p5, %p128_p4 }
   0xf   :  { %p131_p7 = pnand %p130_p6, %p124_p3 }
  0x11   :  { %134 = shalt.err (!%p131_p7)
}
  0x12   :  { %19 = dma.hbm_to_vmem [thread:$0]  %s256_s0, 256, %s17_s10, [#allocation3]  }
  0x13   :  { %s135_s25 = scalar_lea.hbm %s257_s1, 256 }
  0x14   :  { %p136_p8 = scmp.ne.s32.totalorder %s257_s1, %s135_s25  ;;  %p139_p9 = scmp.lt.u32.totalorder %s135_s25, %s257_s1 }
  0x16   :  { %p141_p10 = pnand %p139_p9, %p136_p8 }
  0x18   :  { %144 = shalt.err (!%p141_p10)
}
  0x19   :  { %s145_s30 = scalar_lea.vmem %s27_s12, 256  ;;  %p150_p12 = scmp.lt.s32.totalorder %s27_s12, %s27_s12 }
  0x1a   :  { %p146_p11 = scmp.ne.s32.totalorder %s27_s12, %s145_s30  ;;  %p151_p13 = scmp.lt.s32.totalorder %s145_s30, %s145_s30 }
  0x1c   :  { %p152_p0 = por %p151_p13, %p150_p12 }
  0x1e   :  { %p153_p1 = pnand %p152_p0, %p146_p11 }
  0x20   :  { %156 = shalt.err (!%p153_p1)
}
  0x21   :  { %29 = dma.hbm_to_vmem [thread:$0]  %s257_s1, 256, %s27_s12, [#allocation6]  }
  0x22   :  { %187 = dma.done.wait [#allocation3], 256  }
  0x23   :  { %188 = vsyncadd [#allocation3], 4294967040 }
  0x24   :  { %189 = dma.done.wait [#allocation6], 256  }
  0x25   :  { %190 = vsyncadd [#allocation6], 4294967040  ;;  %v203_v0 = vmov 0.0   ;;  %s197_s4 = smov 0  }
  0x26   :  { %40 = vst [vmem:[#allocation7] sm:$0x3] %v203_v0 }
  0x2d   :  { %v41_v1 = vld [vmem:[#allocation7] sm:$0x3]  }
  0x2e   :  { %v193_v2 = vmov %v41_v1  }
  0x2f LB: > { %s90_s5 = sshll.u32 %s199_s4, 7  ;;  %s47_s4 = sadd.s32 1, %s199_s4   ;;  %s199_s4 = sphi %s197_s4, %s47_s4   ;;  %v195_v2 = vphi %v193_v2, %v194_v2  }
  0x30   : > { %s50_s6 = sshra.s32 %s90_s5, 7  ;;  %p44_p2 = scmp.ge.s32.totalorder %s47_s4, 8  }
  0x31   : > { %s91_s7 = sshll.u32 %s50_s6, 1  ;;  %s204_s1 = smov (%p44_p2), [#allocation7]  }
  0x32   : > { %s53_s8 = scalar_lea.vmem [#allocation2], %s91_s7  ;;  %s56_s9 = scalar_lea.vmem [#allocation5], %s91_s7 }
  0x33   : > { %v54_v3 = vld [vmem:[%s53_s8] sm:$0x3]  ;;  %s68_s10 = sshll.u32 (%p44_p2), %s204_s1, 4  ;;  %s69_s10 = int_to_ptr.vmem [resolvable:$true] %s68_s10 }
  0x34   : > { %v57_v4 = vld [vmem:[%s56_s9] sm:$0x3]  ;;  %s157_s11 = scalar_lea.vmem (%p44_p2), %s69_s10, 32  ;;  %p162_p4 = scmp.lt.s32.totalorder (%p44_p2), %s69_s10, %s69_s10 }
  0x35   : > { %v58_v5 = vsub.f32 %v54_v3, %v57_v4  ;;  %46 = sbr.rel (!%p44_p2) target bundleno = 47 (0x2f), region = 49  ;;  %p158_p3 = scmp.ne.s32.totalorder (%p44_p2), %s69_s10, %s157_s11 }
  0x36   :  { %p163_p5 = scmp.lt.s32.totalorder (%p44_p2), %s157_s11, %s157_s11 }
  0x37   : > { %v59_v6 = vmul.f32 %v58_v5, %v58_v5 }
  0x38   :  { %p164_p6 = por (%p44_p2), %p163_p5, %p162_p4 }
  0x39   : > { %v60_v7 = vadd.f32 %v195_v2, %v59_v6  }
  0x3a   :  { %p165_p7 = pnand (%p44_p2), %p164_p6, %p158_p3 }
  0x3b   : > { %v194_v2 = vmov %v60_v7   ;;  %61 = vst [vmem:[#allocation7] sm:$0x3] (%p44_p2), %v60_v7 }
  0x3c   :  { %168 = shalt.err (!%p165_p7)
}
  0x3d   :  { %s169_s14 = scalar_lea.hbm %s258_s2, 32 }
  0x3e   :  { %p170_p8 = scmp.ne.s32.totalorder %s258_s2, %s169_s14  ;;  %p173_p9 = scmp.lt.u32.totalorder %s169_s14, %s258_s2 }
  0x40   :  { %p175_p10 = pnand %p173_p9, %p170_p8 }
  0x42   :  { %178 = shalt.err (!%p175_p10)
}
  0x43   :  { %71 = dma.vmem_to_hbm [thread:$0]  %s69_s10, 32, %s258_s2, [#allocation4]  }
  0x44   :  { %191 = dma.done.wait [#allocation4], 32  }
  0x45   :  { %192 = vsyncadd [#allocation4], 4294967264 }
  0x46   :  { %75 = vsyncpa [#allocation3], 1 }
  0x47   :  { %76 = vsyncpa [#allocation6], 1 }
  0x48   :  { %77 = vsyncpa [#allocation4], 1 }

</bundles_post_ra>
